<compile_context>
chip_gen: v5e
topology: v5e:2x2
jax: 0.10.0
libtpu: 0.0.40
codegen_flags: <defaults>
</compile_context>

<pallas_src>
import functools

import jax
import jax.numpy as jnp
import numpy as np
from jax import lax
from jax.experimental import pallas as pl
from jax.experimental.pallas import tpu as pltpu


def _round_up(x, m):
    return (x + m - 1) // m * m


def _layer_norm(x, gamma, beta, eps, hidden):
    """LayerNorm over the last dim (width == hidden), f32 math, clamped variance."""
    inv_h = 1.0 / hidden
    s1 = jnp.sum(x, axis=-1, keepdims=True)
    s2 = jnp.sum(x * x, axis=-1, keepdims=True)
    mean = s1 * inv_h
    var = jnp.maximum(s2 * inv_h - mean * mean, 0.0)   # clamp: no NaN from rsqrt
    y = (x - mean) * lax.rsqrt(var + eps)
    # Dropout(p=0.0) is the identity.
    return y * gamma + beta


# -----------------------------------------------------------------------------
# Path A: small vocab -- table resident in VMEM, one-hot MXU gather.
# -----------------------------------------------------------------------------
def _resident_kernel(ids_ref, table_ref, gamma_ref, beta_ref, out_ref, *, eps, hidden):
    ids = ids_ref[...]                                   # (tn, 1) int32
    tbl = table_ref[...]                                 # (Vp, H) native float dtype
    tn = ids.shape[0]
    vp = tbl.shape[0]
    # One-hot gather on the MXU: rows with a single 1.0 pick the embedding exactly.
    onehot = (ids == lax.broadcasted_iota(jnp.int32, (tn, vp), 1)).astype(tbl.dtype)
    x = jnp.dot(onehot, tbl, preferred_element_type=jnp.float32)   # (tn, H) f32
    y = _layer_norm(x, gamma_ref[...], beta_ref[...], eps, hidden)
    out_ref[...] = y.astype(out_ref.dtype)


# -----------------------------------------------------------------------------
# Path B: large vocab -- HBM table, per-row DMA gather, double-buffered across
# grid steps (tile i+1's gather overlaps tile i's LayerNorm).
# -----------------------------------------------------------------------------
def _hbm_gather_kernel(ids_ref, emb_hbm, gamma_ref, beta_ref, out_ref,
                       x_vmem, sems, *, eps, hidden, tn, n_tiles, unroll):
    i = pl.program_id(0)
    slot = i % 2                                         # tile k always lands in slot k%2

    def issue_tile(tile_idx, slot_idx):
        # All tn row copies issued up front (deep DMA window); ids are read from SMEM
        # here, i.e. every id read happens BEFORE any .wait() on this step.
        base = tile_idx * tn

        def body(j, carry):
            tid = ids_ref[base + j]                      # scalar token id from SMEM
            pltpu.make_async_copy(
                emb_hbm.at[pl.ds(tid, 1), :],            # (1, H) row in native dtype
                x_vmem.at[slot_idx, pl.ds(j, 1), :],     # unique destination slot
                sems.at[slot_idx],
            ).start()
            return carry

        lax.fori_loop(0, tn, body, 0, unroll=unroll)

    def wait_tile(slot_idx):
        # One wait per issued copy on this slot's semaphore (all destinations unique,
        # and we wait for all tn before reading any of them).
        def body(j, carry):
            pltpu.make_async_copy(
                emb_hbm.at[pl.ds(0, 1), :],
                x_vmem.at[slot_idx, pl.ds(j, 1), :],
                sems.at[slot_idx],
            ).wait()
            return carry

        lax.fori_loop(0, tn, body, 0, unroll=unroll)

    # Prime the pipeline: only the very first tile has nothing prefetched for it.
    @pl.when(i == 0)
    def _():
        issue_tile(0, 0)

    # Prefetch the NEXT tile's rows into the other slot; its DMAs fly while we
    # wait/compute on the current tile.
    @pl.when(i + 1 < n_tiles)
    def _():
        issue_tile(i + 1, 1 - slot)

    # Retire the current tile (its copies were issued on the previous grid step,
    # so by now they are largely complete).
    wait_tile(slot)

    x = x_vmem[slot].astype(jnp.float32)                 # (tn, H) upcast in-kernel
    y = _layer_norm(x, gamma_ref[...], beta_ref[...], eps, hidden)
    out_ref[...] = y.astype(out_ref.dtype)


# -----------------------------------------------------------------------------
# Wrapper
# -----------------------------------------------------------------------------
def simple_encoder(tokens, emb, gamma, beta, *, eps=1e-5, tn=512,
                   out_dtype=jnp.float32, force_hbm_gather=False):
    """tokens: [B, S] int; emb: [V, H]; gamma/beta: [H] -> [B, S, H] out_dtype."""
    B, S = tokens.shape
    V, H = emb.shape
    N = B * S

    emb_itemsize = jnp.dtype(emb.dtype).itemsize
    res_dtype = emb.dtype if jnp.issubdtype(emb.dtype, jnp.floating) else jnp.float32
    res_itemsize = jnp.dtype(res_dtype).itemsize
    Vp = _round_up(V, 128)

    # Resident fast path only for genuinely small tables (keeps 2x table + buffers
    # comfortably under v7x's 64 MiB VMEM and keeps the one-hot matmul cheap).
    use_resident = (not force_hbm_gather
                    and Vp <= 4096
                    and 2 * Vp * H * res_itemsize <= 16 * 1024 * 1024)

    # Tile size: multiple of 8; small inputs still get >= 2 grid blocks (v7x has 2
    # TensorCores); clamp so scratch + double-buffered output fit VMEM on all chips.
    tn = max(8, min(int(tn), _round_up(max(N // 2, 1), 8)))
    while tn > 8 and 2 * tn * H * (emb_itemsize + 4) > 40 * 1024 * 1024:
        tn = max(8, _round_up(tn // 2, 8))
    if use_resident:
        while tn > 8 and tn * Vp * res_itemsize + 2 * tn * H * 4 > 16 * 1024 * 1024:
            tn = max(8, _round_up(tn // 2, 8))

    n_pad = _round_up(N, tn)
    n_tiles = n_pad // tn

    # Token ids (clamped so gathers never read out of range; pad rows use id 0).
    ids = jnp.clip(tokens.reshape(N).astype(jnp.int32), 0, V - 1)
    if n_pad != N:
        ids = jnp.pad(ids, (0, n_pad - N))

    # LayerNorm affine params are tiny -- (1, H) f32 blocks.
    gamma_f = gamma.astype(jnp.float32).reshape(1, H)
    beta_f = beta.astype(jnp.float32).reshape(1, H)

    vmem_limit = 48 * 1024 * 1024   # < v7x 64 MiB physical, > default scoped limits

    if use_resident:
        # Small-table path: pad only the (small) table's vocab dim to a 128 multiple
        # so the one-hot contraction is lane-aligned; padded rows are never selected.
        tbl = emb if emb.dtype == res_dtype else emb.astype(res_dtype)
        if Vp != V:
            tbl = jnp.pad(tbl, ((0, Vp - V), (0, 0)))
        kernel = functools.partial(_resident_kernel, eps=float(eps), hidden=H)
        out = pl.pallas_call(
            kernel,
            out_shape=jax.ShapeDtypeStruct((n_pad, H), out_dtype),
            grid=(n_tiles,),
            in_specs=[
                pl.BlockSpec((tn, 1), lambda i: (i, 0)),    # token ids (VMEM)
                pl.BlockSpec((Vp, H), lambda i: (0, 0)),    # table resident in VMEM
                pl.BlockSpec((1, H), lambda i: (0, 0)),     # gamma
                pl.BlockSpec((1, H), lambda i: (0, 0)),     # beta
            ],
            out_specs=pl.BlockSpec((tn, H), lambda i: (i, 0)),
            compiler_params=pltpu.CompilerParams(
                dimension_semantics=("parallel",),          # megacore on v7x
                vmem_limit_bytes=vmem_limit),
        )(ids.reshape(n_pad, 1), tbl, gamma_f, beta_f)
    else:
        # Large-table path: table stays in HBM in its NATIVE dtype (never touched by
        # the wrapper); ids are scalar-prefetched to SMEM; gather is double-buffered
        # across grid steps, so the grid axis must run sequentially ("arbitrary").
        kernel = functools.partial(_hbm_gather_kernel, eps=float(eps), hidden=H,
                                   tn=tn, n_tiles=n_tiles, unroll=8)
        out = pl.pallas_call(
            kernel,
            out_shape=jax.ShapeDtypeStruct((n_pad, H), out_dtype),
            grid_spec=pltpu.PrefetchScalarGridSpec(
                num_scalar_prefetch=1,                                  # ids -> SMEM
                grid=(n_tiles,),
                in_specs=[
                    pl.BlockSpec(memory_space=pl.ANY),                  # table in HBM
                    pl.BlockSpec((1, H), lambda i, ids_ref: (0, 0)),    # gamma
                    pl.BlockSpec((1, H), lambda i, ids_ref: (0, 0)),    # beta
                ],
                out_specs=pl.BlockSpec((tn, H), lambda i, ids_ref: (i, 0)),
                scratch_shapes=[
                    pltpu.VMEM((2, tn, H), emb.dtype),   # double-buffered gathered rows
                    pltpu.SemaphoreType.DMA((2,)),       # one DMA sem per buffer slot
                ],
            ),
            compiler_params=pltpu.CompilerParams(
                dimension_semantics=("arbitrary",),
                vmem_limit_bytes=vmem_limit),
        )(ids, emb, gamma_f, beta_f)

    if n_pad != N:
        out = out[:N]
    return out.reshape(B, S, H)      # pure reshape when N % tn == 0 (no extra copy)


def reference(tokens, emb, gamma, beta, eps=1e-5):
    x = emb[tokens]                                      # gather
    mean = jnp.mean(x, axis=-1, keepdims=True)
    var = jnp.mean((x - mean) ** 2, axis=-1, keepdims=True)
    return (x - mean) * lax.rsqrt(var + eps) * gamma + beta


if __name__ == "__main__":
    vocab_size = 50
    hidden_size = 32
    padding_idx = 0
    layer_norm_eps = 1e-5
    B, S = 2, 8

    key = jax.random.PRNGKey(0)
    k_emb, k_tok, k_g, k_b = jax.random.split(key, 4)

    # nn.Embedding init: N(0,1) with the padding_idx row zeroed.
    emb = jax.random.normal(k_emb, (vocab_size, hidden_size), dtype=jnp.float32)
    emb = emb.at[padding_idx].set(0.0)
    # LayerNorm affine parameters (randomized so the affine path is exercised).
    gamma = 1.0 + 0.1 * jax.random.normal(k_g, (hidden_size,), dtype=jnp.float32)
    beta = 0.1 * jax.random.normal(k_b, (hidden_size,), dtype=jnp.float32)

    tokens = jax.random.randint(k_tok, (B, S), 0, vocab_size, dtype=jnp.int32)
    tokens = tokens.at[:, -2:].set(padding_idx)          # include padding tokens

    ref = reference(tokens, emb, gamma, beta, eps=layer_norm_eps)

    # Path A: VMEM-resident table (default for this small vocab).
    out_res = jax.block_until_ready(
        simple_encoder(tokens, emb, gamma, beta, eps=layer_norm_eps))
    np.testing.assert_allclose(np.asarray(out_res), np.asarray(ref),
                               atol=1e-4, rtol=1e-4)

    # Path B: HBM table with double-buffered per-row DMA gather.
    out_hbm = jax.block_until_ready(
        simple_encoder(tokens, emb, gamma, beta, eps=layer_norm_eps,
                       force_hbm_gather=True))
    np.testing.assert_allclose(np.asarray(out_hbm), np.asarray(ref),
                               atol=1e-4, rtol=1e-4)

    print("KERNEL_OK")
</pallas_src>

<mosaic_0001>
module attributes {stable_mosaic.version = 11 : i64} {
  func.func @_resident_kernel(%arg0: i32, %arg1: memref<8x1xi32, #tpu.memory_space<vmem>>, %arg2: memref<128x32xf32, #tpu.memory_space<vmem>>, %arg3: memref<1x32xf32, #tpu.memory_space<vmem>>, %arg4: memref<1x32xf32, #tpu.memory_space<vmem>>, %arg5: memref<8x32xf32, #tpu.memory_space<vmem>>) attributes {dimension_semantics = [#tpu.dimension_semantics<parallel>], iteration_bounds = array<i64: 2>, scalar_prefetch = 0 : i64, scratch_operands = 0 : i64, tpu.core_type = #tpu.core_type<tc>, window_params = [{transform_indices = @transform_0, window_bounds = array<i64: 8, 1>}, {pipeline_mode = #tpu.pipeline_mode<synchronous>, transform_indices = @transform_1, window_bounds = array<i64: 128, 32>}, {pipeline_mode = #tpu.pipeline_mode<synchronous>, transform_indices = @transform_2, window_bounds = array<i64: 1, 32>}, {pipeline_mode = #tpu.pipeline_mode<synchronous>, transform_indices = @transform_3, window_bounds = array<i64: 1, 32>}, {transform_indices = @transform_4, window_bounds = array<i64: 8, 32>}]} {
    %c0 = arith.constant 0 : index
    %c0_0 = arith.constant 0 : index
    %0 = vector.load %arg1[%c0, %c0_0] : memref<8x1xi32, #tpu.memory_space<vmem>>, vector<8x1xi32>
    %c0_1 = arith.constant 0 : index
    %c0_2 = arith.constant 0 : index
    %1 = vector.load %arg2[%c0_1, %c0_2] : memref<128x32xf32, #tpu.memory_space<vmem>>, vector<128x32xf32>
    %2 = tpu.iota {dimensions = array<i32: 1>} : vector<8x128xi32>
    %3 = vector.broadcast %0 : vector<8x1xi32> to vector<8x128xi32>
    %4 = arith.cmpi eq, %3, %2 : vector<8x128xi32>
    %5 = arith.extui %4 : vector<8x128xi1> to vector<8x128xi32>
    %6 = arith.sitofp %5 : vector<8x128xi32> to vector<8x128xf32>
    %cst = arith.constant dense<0.000000e+00> : vector<8x32xf32>
    %7 = tpu.matmul %6, %1, %cst {dimension_numbers = #tpu.dot_dimension_numbers<[1], [0], [0], [1], [0, 0, 1, 1], [], []>} : vector<8x128xf32>, vector<128x32xf32>, vector<8x32xf32> -> vector<8x32xf32>
    %c0_3 = arith.constant 0 : index
    %c0_4 = arith.constant 0 : index
    %8 = vector.load %arg3[%c0_3, %c0_4] : memref<1x32xf32, #tpu.memory_space<vmem>>, vector<1x32xf32>
    %c0_5 = arith.constant 0 : index
    %c0_6 = arith.constant 0 : index
    %9 = vector.load %arg4[%c0_5, %c0_6] : memref<1x32xf32, #tpu.memory_space<vmem>>, vector<1x32xf32>
    %cst_7 = arith.constant dense<0.000000e+00> : vector<8xf32>
    %10 = vector.multi_reduction <add>, %7, %cst_7 [1] : vector<8x32xf32> to vector<8xf32>
    %11 = vector.shape_cast %10 : vector<8xf32> to vector<8x1xf32>
    %12 = arith.mulf %7, %7 : vector<8x32xf32>
    %cst_8 = arith.constant dense<0.000000e+00> : vector<8xf32>
    %13 = vector.multi_reduction <add>, %12, %cst_8 [1] : vector<8x32xf32> to vector<8xf32>
    %14 = vector.shape_cast %13 : vector<8xf32> to vector<8x1xf32>
    %cst_9 = arith.constant 3.125000e-02 : f32
    %15 = vector.broadcast %cst_9 : f32 to vector<8x1xf32>
    %16 = arith.mulf %11, %15 : vector<8x1xf32>
    %cst_10 = arith.constant 3.125000e-02 : f32
    %17 = vector.broadcast %cst_10 : f32 to vector<8x1xf32>
    %18 = arith.mulf %14, %17 : vector<8x1xf32>
    %19 = arith.mulf %16, %16 : vector<8x1xf32>
    %20 = arith.subf %18, %19 : vector<8x1xf32>
    %cst_11 = arith.constant 0.000000e+00 : f32
    %21 = vector.broadcast %cst_11 : f32 to vector<8x1xf32>
    %22 = arith.maximumf %20, %21 : vector<8x1xf32>
    %23 = vector.broadcast %16 : vector<8x1xf32> to vector<8x32xf32>
    %24 = arith.subf %7, %23 : vector<8x32xf32>
    %cst_12 = arith.constant 9.99999974E-6 : f32
    %25 = vector.broadcast %cst_12 : f32 to vector<8x1xf32>
    %26 = arith.addf %22, %25 : vector<8x1xf32>
    %27 = math.rsqrt %26 : vector<8x1xf32>
    %28 = vector.broadcast %27 : vector<8x1xf32> to vector<8x32xf32>
    %29 = arith.mulf %24, %28 : vector<8x32xf32>
    %30 = vector.broadcast %8 : vector<1x32xf32> to vector<8x32xf32>
    %31 = arith.mulf %29, %30 : vector<8x32xf32>
    %32 = vector.broadcast %9 : vector<1x32xf32> to vector<8x32xf32>
    %33 = arith.addf %31, %32 : vector<8x32xf32>
    %c0_13 = arith.constant 0 : index
    %c0_14 = arith.constant 0 : index
    %34 = vector.load %arg5[%c0_13, %c0_14] : memref<8x32xf32, #tpu.memory_space<vmem>>, vector<8x32xf32>
    tpu.vector_store %arg5[%c0_13, %c0_14], %33 {strides = array<i32>} : memref<8x32xf32, #tpu.memory_space<vmem>>, vector<8x32xf32>,
    return
  }
  func.func @transform_0(%arg0: i32) -> (i32, i32) {
    %c0_i32 = arith.constant 0 : i32
    %c0_i32_0 = arith.constant 0 : i32
    return %arg0, %c0_i32 : i32, i32
  }
  func.func @transform_1(%arg0: i32) -> (i32, i32) {
    %c0_i32 = arith.constant 0 : i32
    %c0_i32_0 = arith.constant 0 : i32
    %c0_i32_1 = arith.constant 0 : i32
    return %c0_i32, %c0_i32_0 : i32, i32
  }
  func.func @transform_2(%arg0: i32) -> (i32, i32) {
    %c0_i32 = arith.constant 0 : i32
    %c0_i32_0 = arith.constant 0 : i32
    %c0_i32_1 = arith.constant 0 : i32
    return %c0_i32, %c0_i32_0 : i32, i32
  }
  func.func @transform_3(%arg0: i32) -> (i32, i32) {
    %c0_i32 = arith.constant 0 : i32
    %c0_i32_0 = arith.constant 0 : i32
    %c0_i32_1 = arith.constant 0 : i32
    return %c0_i32, %c0_i32_0 : i32, i32
  }
  func.func @transform_4(%arg0: i32) -> (i32, i32) {
    %c0_i32 = arith.constant 0 : i32
    %c0_i32_0 = arith.constant 0 : i32
    return %arg0, %c0_i32 : i32, i32
  }
}

</mosaic_0001>

<bundles_post_ra>
// kernel: tpu_custom_call.1
= control target key start
LH: loop header
LB: loop body
LE: loop exit
PB: predicated region body
PF: predicated region fallthrough
CT: control target
= control target key end

     0   :  { %9 = vsyncpa [#allocation3], 0  ;;  %s641_s0 = inlined_call_operand.vmem [shape: s32[16,1], index: 0, kind: input, shape index: {}]   ;;  %s642_s1 = inlined_call_operand.vmem [shape: f32[128,32], index: 1, kind: input, shape index: {}]   ;;  %s643_s2 = inlined_call_operand.vmem [shape: f32[1,32], index: 2, kind: input, shape index: {}]   ;;  %s644_s3 = inlined_call_operand.vmem [shape: f32[1,32], index: 3, kind: input, shape index: {}]   ;;  %s645_s4 = inlined_call_operand.hbm [shape: f32[16,32], index: 4, kind: output, shape index: {}]  }
   0x1   :  { %11 = vsyncpa [#allocation3 + $0x1], 0  ;;  %s499_s15 = smov 0   ;;  %s501_s16 = smov 0  }
   0x2   :  { %s503_s17 = smov 0   ;;  %s505_s18 = smov 0  }
   0x3 LB: > { %s520_s19 = sadd.s32 4294967295, %s470_s18   ;;  %s350_s20 = sadd.s32 4294967294, %s470_s18   ;;  %s470_s18 = sphi %s505_s18, %s651_s18   ;;  %s466_s17 = sphi %s503_s17, %s650_s17   ;;  %s462_s16 = sphi %s501_s16, %s649_s16   ;;  %s458_s15 = sphi %s499_s15, %s648_s15  }
   0x4   : > { %s524_s21 = sadd.s32 1, %s470_s18   ;;  %s113_s22 = sadd.s32 1, %s466_s17 }
   0x5   : > { %s110_s23 = ssub.s32 %s470_s18, %s524_s21  ;;  %p123_p0 = scmp.ne.s32.totalorder %s466_s17, %s462_s16 }
   0x6   : > { %p111_p1 = scmp.eq.s32.totalorder %s110_s23, 0  ;;  %p124_p2 = scmp.eq.s32.totalorder %s520_s19, 1 }
   0x7   : > { %p129_p3 = scmp.ne.s32.totalorder %s462_s16, %s458_s15  ;;  %p130_p4 = scmp.eq.s32.totalorder %s350_s20, 1 }
   0x8   : > { %s535_s24 = scalar_select %p111_p1, %s466_s17, %s113_s22  }
   0x9   : > { %p537_p5 = por %p124_p2, %p123_p0  ;;  %p541_p6 = por %p130_p4, %p129_p3 }
   0xa   : > { %p353_p7 = scmp.ge.s32.totalorder %s470_s18, 1  ;;  %p164_p8 = scmp.lt.s32.totalorder %s470_s18, 3 }
   0xc   : > { %p165_p9 = pnand %p353_p7, %p164_p8 }
   0xd   : > { %p189_p10 = scmp.lt.s32.totalorder (!%p165_p9), %s520_s19, 1  ;;  %s186_s30 = sand.u32 (!%p165_p9), 1, %s462_s16  }
   0xe   : > { %168 = sbr.rel (%p165_p9) target bundleno = 420 (0x1a4), region = 36  ;;  %s359_s6 = sshll.u32 (!%p165_p9), %s520_s19, 3 }
   0xf   : > { %s286_s11 = scalar_lea.hbm (!%p165_p9), %s645_s4, %s359_s6  ;;  %s276_s22 = scalar_lea.sflag (!%p165_p9), [#allocation3], %s186_s30 }
  0x10   : > { %s290_s20 = sshll.u32 (!%p165_p9), %s286_s11, 4  ;;  %s291_s20 = int_to_ptr.hbm [resolvable:$true] %s290_s20 }
  0x11   : > { %s422_s23 = sshra.s32 (!%p165_p9), %s291_s20, 4  ;;  %s423_s23 = int_to_ptr.hbm [resolvable:$true] %s422_s23 }
  0x12   : > { %s424_s27 = scalar_lea.hbm (!%p165_p9), %s423_s23, 8  ;;  %p429_p0 = scmp.lt.s32.totalorder (!%p165_p9), %s423_s23, %s645_s4 }
  0x13   : > { %v209_v0 = vld [vmem:[%s642_s1 + $0x78] sm:$0xff]  ;;  %v208_v1 = vld [vmem:[%s642_s1 + $0x70] sm:$0xff]  ;;  %v472_v2 = vmov 0   ;;  %s190_s5 = scalar_select %p189_p10, %s520_s19, 1  ;;  %v207_v3 = vld [vmem:[%s642_s1 + $0x68] sm:$0xff]  ;;  %v210_v18 = vlaneseq  ;;  %v473_v21 = vmov 1.0  }
  0x14   : > { %403 = vset.pattern.permute.xlu0 %v472_v2  ;;  %218 = vmatpush.msra.mxu0 %v209_v0  ;;  %v206_v4 = vld [vmem:[%s642_s1 + $0x60] sm:$0xff]  ;;  %v205_v6 = vld [vmem:[%s642_s1 + $0x58] sm:$0xff]  ;;  %v204_v7 = vld [vmem:[%s642_s1 + $0x50] sm:$0xff]  ;;  %vm240_vm1 = vcmask 261120   ;;  %p425_p11 = scmp.ne.s32.totalorder %s423_s23, %s424_s27 }
  0x15   : > { %s355_s8 = sshll.u32 %s190_s5, 3  ;;  %v203_v8 = vld [vmem:[%s642_s1 + $0x48] sm:$0xff]  ;;  %v202_v9 = vld [vmem:[%s642_s1 + $0x40] sm:$0xff]  ;;  %v201_v10 = vld [vmem:[%s642_s1 + $0x38] sm:$0xff]  ;;  %v211_v19 = vand.u32 127, %v210_v18  ;;  %s354_s5 = sshll.u32 %s186_s30, 3 }
  0x16   : > { %219 = vmatpush.msra.mxu0 %v208_v1  ;;  %s192_s13 = scalar_lea.vmem %s641_s0, %s355_s8  ;;  %v200_v11 = vld [vmem:[%s642_s1 + $0x30] sm:$0xff]  ;;  %v199_v12 = vld [vmem:[%s642_s1 + $0x28] sm:$0xff]  ;;  %v198_v13 = vld [vmem:[%s642_s1 + $0x20] sm:$0xff]  ;;  %s188_s19 = scalar_lea.vmem [#allocation2], %s354_s5 }
  0x17   : > { %v193_v5 = vld [vmem:[%s192_s13] sm:$0xff]  ;;  %v197_v14 = vld [vmem:[%s642_s1 + $0x18] sm:$0xff]  ;;  %v196_v15 = vld [vmem:[%s642_s1 + $0x10] sm:$0xff]  ;;  %s288_s14 = sshll.u32 %s188_s19, 4  ;;  %p426_p12 = pnand %p425_p11, %p537_p5  ;;  %s289_s14 = int_to_ptr.vmem [resolvable:$true] %s288_s14 }
  0x18   : > { %220 = vmatpush.msra.mxu0 %v207_v3  ;;  %213 = vperm.xlu0 %403, %v193_v5   ;;  %v195_v16 = vld [vmem:[%s642_s1 + $0x8] sm:$0xff]  ;;  %v194_v17 = vld [vmem:[%s642_s1] sm:$0xff]  ;;  %s428_s5 = scalar_lea.hbm %s645_s4, 16 }
  0x19   : > { %v404_v41 = vld [vmem:[%s643_s2] ss:$0 sm:$0xff]  ;;  %p427_p13 = pneg %p426_p12  ;;  %p430_p1 = scmp.lt.s32.totalorder %s428_s5, %s424_s27 }
  0x1a   : > { %221 = vmatpush.msra.mxu0 %v206_v4  ;;  %v405_v44 = vld [vmem:[%s644_s3] ss:$0 sm:$0xff] }
  0x1b   : > { %p431_p2 = por %p430_p1, %p429_p0 }
  0x1c   : > { %222 = vmatpush.msra.mxu0 %v205_v6 }
  0x1d   : > { %p432_p3 = pnand %p431_p2, %p427_p13 }
  0x1e   : > { %223 = vmatpush.msra.mxu0 %v204_v7 }
  0x20   : > { %224 = vmatpush.msra.mxu0 %v203_v8 }
  0x22   : > { %225 = vmatpush.msra.mxu0 %v202_v9 }
  0x24   : > { %226 = vmatpush.msra.mxu0 %v201_v10 }
  0x26   : > { %227 = vmatpush.msra.mxu0 %v200_v11 }
  0x28   : > { %228 = vmatpush.msra.mxu0 %v199_v12 }
  0x2a   : > { %229 = vmatpush.msra.mxu0 %v198_v13 }
  0x2c   : > { %230 = vmatpush.msra.mxu0 %v197_v14 }
  0x2e   : > { %231 = vmatpush.msra.mxu0 %v196_v15 }
  0x30   : > { %232 = vmatpush.msra.mxu0 %v195_v16 }
  0x32   : > { %233 = vmatpush.msra.mxu0 %v194_v17 }
  0x8a   : > { %v214_v20 = vpop.permute.xlu0 %213 }
  0x8b   : > { %vm215_vm0 = vcmp.eq.s32.totalorder %v214_v20, %v211_v19 }
  0x8c   : > { %357 = vmatmul.msk.f32.vlgmr.msra.gmra.mxu0 %vm215_vm0, %v473_v21 }
 0x109   : > { %v235_v22 = vpop.f32.mrf.mxu0 }
 0x10a   : > { %v241_v23 = vsel %vm240_vm1, %v235_v22, 0.0  ;;  %v244_v24 = vmul.f32 %v235_v22, %v235_v22 }
 0x10b   : > { %242 = vadd.xlane.f32.xlu0 %v241_v23 }
 0x10c   : > { %v245_v25 = vsel %vm240_vm1, %v244_v24, 0.0 }
 0x10d   : > { %246 = vadd.xlane.f32.xlu1 %v245_v25 }
 0x17e   : > { %v243_v26 = vpop.xlane.xlu0 %242 }
 0x17f   : > { %v248_v27 = vmul.f32 0.03125, %v243_v26 }
 0x180   : > { %v247_v28 = vpop.xlane.xlu1 %246 }
 0x181   : > { %v250_v29 = vmul.f32 %v248_v27, %v248_v27  ;;  %v249_v30 = vmul.f32 0.03125, %v247_v28  ;;  %v253_v40 = vsub.f32 %v235_v22, %v248_v27 }
 0x183   : > { %v251_v31 = vsub.f32 %v249_v30, %v250_v29 }
 0x185   : > { %v252_v32 = vmax.f32 %v251_v31, 0.0 }
 0x187   : > { %v254_v33 = vadd.f32 1e-05, %v252_v32 }
 0x189   : > { %406 = vrsqrt.f32 %v254_v33  ;;  %vm261_vm3 = vweird.f32 %v254_v33 }
 0x18f   : > { %v407_v34 = vpop.eup %406 }
 0x190   : > { %v256_v35 = vmul.f32 %v407_v34, %v254_v33  ;;  %vm262_vm2 = vweird.f32 %v407_v34 }
 0x191   : > { %vm263_vm4 = vmor %vm261_vm3, %vm262_vm2 }
 0x192   : > { %v257_v36 = vmul.f32 %v407_v34, %v256_v35 }
 0x194   : > { %v258_v37 = vmul.f32 0.5, %v257_v36 }
 0x196   : > { %v259_v38 = vsub.f32 1.5, %v258_v37 }
 0x198   : > { %v260_v39 = vmul.f32 %v407_v34, %v259_v38 }
 0x19a   : > { %v264_v42 = vsel %vm263_vm4, %v407_v34, %v260_v39 }
 0x19b   : > { %v265_v43 = vmul.f32 %v264_v42, %v253_v40 }
 0x19d   : > { %v269_v45 = vmul.f32 %v404_v41, %v265_v43 }
 0x19f   : > { %v273_v46 = vadd.f32 %v405_v44, %v269_v45 }
 0x1a1   : > { %274 = vst.msk [vmem:[%s188_s19] sm:$0xff] %vm240_vm1, %v273_v46 }
 0x1a2   : > { %435 = shalt.err (!%p432_p3)
}
 0x1a3   : > { %362 = dma.vmem_to_hbm [thread:$0]  (%p537_p5), %s289_s14, 128, %s291_s20, %s276_s22  }
 0x1a4 PF: > { %p368_p4 = scmp.ge.s32.totalorder %s470_s18, 2  ;;  %s302_s30 = sand.u32 1, %s458_s15  }
 0x1a5   : > { %s303_s8 = scalar_lea.sflag [#allocation3], %s302_s30 }
 0x1a6   : > { %p365_p7 = pnand %p368_p4, %p541_p6 }
 0x1a8   : > { %p366_p8 = pneg %p365_p7 }
 0x1aa   : > { %453 = dma.done.wait (%p366_p8), %s303_s8, 128  }
 0x1ab   : > { %455 = vsyncadd (%p366_p8), %s303_s8, 4294967168  ;;  %p14_p9 = scmp.ge.s32.totalorder %s524_s21, 4   ;;  %s648_s15 = smov %s462_s16 }
 0x1ac   : > { %s649_s16 = smov %s466_s17  ;;  %s650_s17 = smov %s535_s24 }
 0x1ad   : > { %s651_s18 = smov %s524_s21  ;;  %16 = sbr.rel (!%p14_p9) target bundleno = 3 (0x3), region = 71 }
 0x1b2   :  { %309 = vsyncpa [#allocation3], 1 }
 0x1b3   :  { %311 = vsyncpa [#allocation3 + $0x1], 1 }

</bundles_post_ra>
